<compile_context>
chip_gen: v5e
topology: v5e:2x2
jax: 0.10.0
libtpu: 0.0.40
codegen_flags: <defaults>
</compile_context>

<pallas_src>
import jax
import jax.numpy as jnp
from jax.experimental import pallas as pl
from jax.experimental.pallas import tpu as pltpu


def _twinned_critic_kernel(x_ref, w1_ref, b_ref, w2_ref, w3_ref, out_ref):
    """Single invocation; computes both critics in one lane-packed pass.

    x_ref  : (B, Ds+Da)   concat(state, action)                          (VMEM)
    w1_ref : (Ds+Da, 2H)  layer-1 weights, both critics packed on lanes  (VMEM)
    b_ref  : (3, 2H)      row 0 = b1, row 1 = b2, row 2 = [b3_0, b3_1, 0...]  (VMEM)
    w2_ref : (2H, 2H)     block-diagonal layer-2 weights                 (VMEM)
    w3_ref : (2H, 2)      block-diagonal layer-3 weights                 (VMEM)
    out_ref: (B, 2)       column c = q of critic c
    """
    x = x_ref[...]                                           # (B, Din)
    b = b_ref[...]                                           # (3, 2H) -- one padded tile

    # Layer 1: Linear(Din -> 2H) + ReLU   (one dot for both critics)
    h1 = jnp.dot(x, w1_ref[...], preferred_element_type=jnp.float32) + b[0:1, :]
    h1 = jnp.maximum(h1, 0.0)                                # (B, 2H)

    # Layer 2: block-diagonal Linear(2H -> 2H) + ReLU
    h2 = jnp.dot(h1, w2_ref[...], preferred_element_type=jnp.float32) + b[1:2, :]
    h2 = jnp.maximum(h2, 0.0)                                # (B, 2H)

    # Layer 3: block-diagonal Linear(2H -> 2); result lands directly in output layout.
    q = jnp.dot(h2, w3_ref[...], preferred_element_type=jnp.float32) + b[2:3, 0:2]
    out_ref[...] = q.astype(out_ref.dtype)                   # (B, 2)


def pack_params(params):
    """One-time (init-time) re-layout of standard stacked params into the fused layout."""
    w1, b1, w2, b2, w3, b3 = params
    H = w1.shape[-1]
    f32 = jnp.float32

    # Layer 1: (2, Din, H) -> (Din, 2H)
    w1_packed = jnp.concatenate([w1[0], w1[1]], axis=-1).astype(f32)

    # Layer 2: block-diagonal (2H, 2H); off-diagonal blocks are exactly zero.
    zeros_hh = jnp.zeros((H, H), f32)
    w2_bd = jnp.concatenate(
        [jnp.concatenate([w2[0].astype(f32), zeros_hh], axis=-1),
         jnp.concatenate([zeros_hh, w2[1].astype(f32)], axis=-1)], axis=0)   # (2H, 2H)

    # Layer 3: block-diagonal (2H, 2).
    zeros_h1 = jnp.zeros((H, 1), f32)
    w3_bd = jnp.concatenate(
        [jnp.concatenate([w3[0].astype(f32), zeros_h1], axis=-1),
         jnp.concatenate([zeros_h1, w3[1].astype(f32)], axis=-1)], axis=0)   # (2H, 2)

    # Biases packed into one (3, 2H) slab (single VMEM operand / one padded tile).
    b1_row = jnp.concatenate([b1[0, 0], b1[1, 0]], axis=-1).astype(f32)       # (2H,)
    b2_row = jnp.concatenate([b2[0, 0], b2[1, 0]], axis=-1).astype(f32)       # (2H,)
    b3_row = jnp.zeros((2 * H,), f32).at[0].set(b3[0, 0, 0]).at[1].set(b3[1, 0, 0])
    b_packed = jnp.stack([b1_row, b2_row, b3_row], axis=0)                    # (3, 2H)

    return (w1_packed, b_packed, w2_bd, w3_bd)


def twinned_critic_forward(state, action, packed_params):
    """Runs both critics in one Pallas call; returns (q1, q2), each (B, 1)."""
    w1_p, b_p, w2_bd, w3_bd = packed_params
    x = jnp.concatenate([state, action], axis=-1).astype(jnp.float32)   # (B, Ds+Da)
    B = x.shape[0]

    vmem = pl.BlockSpec(memory_space=pltpu.MemorySpace.VMEM)

    out = pl.pallas_call(
        _twinned_critic_kernel,
        out_shape=jax.ShapeDtypeStruct((B, 2), jnp.float32),
        in_specs=[vmem, vmem, vmem, vmem, vmem],
        out_specs=vmem,
    )(x, w1_p, b_p, w2_bd, w3_bd)

    return out[:, 0:1], out[:, 1:2]


def init_params(key, in_dim, hidden):
    """Deterministic synthetic parameters, stacked for the two critics (standard layout)."""
    ks = jax.random.split(key, 6)
    scale1 = 1.0 / jnp.sqrt(in_dim)
    scale2 = 1.0 / jnp.sqrt(hidden)
    w1 = jax.random.uniform(ks[0], (2, in_dim, hidden), jnp.float32, -scale1, scale1)
    b1 = jax.random.uniform(ks[1], (2, 1, hidden), jnp.float32, -scale1, scale1)
    w2 = jax.random.uniform(ks[2], (2, hidden, hidden), jnp.float32, -scale2, scale2)
    b2 = jax.random.uniform(ks[3], (2, 1, hidden), jnp.float32, -scale2, scale2)
    w3 = jax.random.uniform(ks[4], (2, hidden, 1), jnp.float32, -scale2, scale2)
    b3 = jax.random.uniform(ks[5], (2, 1, 1), jnp.float32, -scale2, scale2)
    return (w1, b1, w2, b2, w3, b3)


def _reference(state, action, params):
    """Pure-JAX reference matching the original module semantics."""
    x = jnp.concatenate([state, action], axis=-1).astype(jnp.float32)
    w1, b1, w2, b2, w3, b3 = params
    outs = []
    for c in range(2):
        h1 = jnp.maximum(x @ w1[c] + b1[c], 0.0)
        h2 = jnp.maximum(h1 @ w2[c] + b2[c], 0.0)
        outs.append(h2 @ w3[c] + b3[c])
    return outs[0], outs[1]


if __name__ == "__main__":
    key = jax.random.PRNGKey(0)
    k_state, k_action, k_params = jax.random.split(key, 3)

    B, STATE_DIM, ACTION_DIM, HIDDEN = 8, 16, 8, 32

    state = jax.random.normal(k_state, (B, STATE_DIM), jnp.float32)
    action = jax.random.normal(k_action, (B, ACTION_DIM), jnp.float32)
    params = init_params(k_params, STATE_DIM + ACTION_DIM, HIDDEN)

    # One-time parameter re-layout (init time, not per forward call).
    packed_params = jax.tree_util.tree_map(jax.block_until_ready, pack_params(params))

    fwd = jax.jit(twinned_critic_forward)
    q1, q2 = fwd(state, action, packed_params)
    q1 = jax.block_until_ready(q1)
    q2 = jax.block_until_ready(q2)

    r1, r2 = _reference(state, action, params)
    assert q1.shape == (B, 1) and q2.shape == (B, 1)
    assert jnp.allclose(q1, r1, atol=1e-4), "critic1 mismatch"
    assert jnp.allclose(q2, r2, atol=1e-4), "critic2 mismatch"

    print("KERNEL_OK")
</pallas_src>

<mosaic_0001>
module attributes {stable_mosaic.version = 11 : i64} {
  func.func @_twinned_critic_kernel(%arg0: memref<8x24xf32, #tpu.memory_space<vmem>>, %arg1: memref<24x64xf32, #tpu.memory_space<vmem>>, %arg2: memref<3x64xf32, #tpu.memory_space<vmem>>, %arg3: memref<64x64xf32, #tpu.memory_space<vmem>>, %arg4: memref<64x2xf32, #tpu.memory_space<vmem>>, %arg5: memref<8x2xf32, #tpu.memory_space<vmem>>) attributes {dimension_semantics = [], scalar_prefetch = 0 : i64, scratch_operands = 0 : i64, tpu.core_type = #tpu.core_type<tc>} {
    %c0 = arith.constant 0 : index
    %c0_0 = arith.constant 0 : index
    %0 = vector.load %arg0[%c0, %c0_0] : memref<8x24xf32, #tpu.memory_space<vmem>>, vector<8x24xf32>
    %c0_1 = arith.constant 0 : index
    %c0_2 = arith.constant 0 : index
    %1 = vector.load %arg2[%c0_1, %c0_2] : memref<3x64xf32, #tpu.memory_space<vmem>>, vector<3x64xf32>
    %c0_3 = arith.constant 0 : index
    %c0_4 = arith.constant 0 : index
    %2 = vector.load %arg1[%c0_3, %c0_4] : memref<24x64xf32, #tpu.memory_space<vmem>>, vector<24x64xf32>
    %cst = arith.constant dense<0.000000e+00> : vector<8x64xf32>
    %3 = tpu.matmul %0, %2, %cst {dimension_numbers = #tpu.dot_dimension_numbers<[1], [0], [0], [1], [0, 0, 1, 1], [], []>} : vector<8x24xf32>, vector<24x64xf32>, vector<8x64xf32> -> vector<8x64xf32>
    %4 = vector.extract_strided_slice %1 {offsets = [0, 0], sizes = [1, 64], strides = [1, 1]} : vector<3x64xf32> to vector<1x64xf32>
    %5 = vector.broadcast %4 : vector<1x64xf32> to vector<8x64xf32>
    %6 = arith.addf %3, %5 : vector<8x64xf32>
    %cst_5 = arith.constant 0.000000e+00 : f32
    %7 = vector.broadcast %cst_5 : f32 to vector<8x64xf32>
    %8 = arith.maximumf %6, %7 : vector<8x64xf32>
    %c0_6 = arith.constant 0 : index
    %c0_7 = arith.constant 0 : index
    %9 = vector.load %arg3[%c0_6, %c0_7] : memref<64x64xf32, #tpu.memory_space<vmem>>, vector<64x64xf32>
    %cst_8 = arith.constant dense<0.000000e+00> : vector<8x64xf32>
    %10 = tpu.matmul %8, %9, %cst_8 {dimension_numbers = #tpu.dot_dimension_numbers<[1], [0], [0], [1], [0, 0, 1, 1], [], []>} : vector<8x64xf32>, vector<64x64xf32>, vector<8x64xf32> -> vector<8x64xf32>
    %11 = vector.extract_strided_slice %1 {offsets = [1, 0], sizes = [1, 64], strides = [1, 1]} : vector<3x64xf32> to vector<1x64xf32>
    %12 = vector.broadcast %11 : vector<1x64xf32> to vector<8x64xf32>
    %13 = arith.addf %10, %12 : vector<8x64xf32>
    %cst_9 = arith.constant 0.000000e+00 : f32
    %14 = vector.broadcast %cst_9 : f32 to vector<8x64xf32>
    %15 = arith.maximumf %13, %14 : vector<8x64xf32>
    %c0_10 = arith.constant 0 : index
    %c0_11 = arith.constant 0 : index
    %16 = vector.load %arg4[%c0_10, %c0_11] : memref<64x2xf32, #tpu.memory_space<vmem>>, vector<64x2xf32>
    %cst_12 = arith.constant dense<0.000000e+00> : vector<8x2xf32>
    %17 = tpu.matmul %15, %16, %cst_12 {dimension_numbers = #tpu.dot_dimension_numbers<[1], [0], [0], [1], [0, 0, 1, 1], [], []>} : vector<8x64xf32>, vector<64x2xf32>, vector<8x2xf32> -> vector<8x2xf32>
    %18 = vector.extract_strided_slice %1 {offsets = [2, 0], sizes = [1, 2], strides = [1, 1]} : vector<3x64xf32> to vector<1x2xf32>
    %19 = vector.broadcast %18 : vector<1x2xf32> to vector<8x2xf32>
    %20 = arith.addf %17, %19 : vector<8x2xf32>
    %c0_13 = arith.constant 0 : index
    %c0_14 = arith.constant 0 : index
    %21 = vector.load %arg5[%c0_13, %c0_14] : memref<8x2xf32, #tpu.memory_space<vmem>>, vector<8x2xf32>
    tpu.vector_store %arg5[%c0_13, %c0_14], %20 {strides = array<i32>} : memref<8x2xf32, #tpu.memory_space<vmem>>, vector<8x2xf32>,
    return
  }
}

</mosaic_0001>

<bundles_post_ra>
// kernel: twinned_critic_forward.1
= control target key start
LH: loop header
LB: loop body
LE: loop exit
PB: predicated region body
PF: predicated region fallthrough
CT: control target
= control target key end

     0   :  { %10 = vsyncpa [#allocation3], 0  ;;  %s168_s21 = smov [#allocation2]   ;;  %s265_s0 = inlined_call_operand.vmem [shape: f32[8,24], index: 0, kind: input, shape index: {}]   ;;  %s266_s1 = inlined_call_operand.vmem [shape: f32[24,64], index: 1, kind: input, shape index: {}]   ;;  %s267_s2 = inlined_call_operand.hbm [shape: f32[3,64], index: 2, kind: input, shape index: {}]   ;;  %s268_s3 = inlined_call_operand.vmem [shape: f32[64,64], index: 3, kind: input, shape index: {}]   ;;  %s269_s4 = inlined_call_operand.vmem [shape: f32[64,2], index: 4, kind: input, shape index: {}]   ;;  %s270_s5 = inlined_call_operand.vmem [shape: f32[8,2], index: 5, kind: output, shape index: {}]  }
   0x1   :  { %s20_s20 = sshll.u32 %s267_s2, 4  ;;  %s22_s22 = sshll.u32 %s168_s21, 4  ;;  %s21_s20 = int_to_ptr.hbm [resolvable:$true] %s20_s20  ;;  %s23_s22 = int_to_ptr.vmem [resolvable:$true] %s22_s22 }
   0x2   :  { %25 = dma.hbm_to_vmem [thread:$0]  %s21_s20, 64, %s23_s22, [#allocation3]  }
   0x3   :  { %166 = dma.done.wait [#allocation3], 64  }
   0x4   :  { %167 = vsyncadd [#allocation3], 4294967232  ;;  %v38_v0 = vld [vmem:[%s266_s1 + $0x10] sm:$0xff]  ;;  %v37_v1 = vld [vmem:[%s266_s1 + $0x8] sm:$0xff]  ;;  %vm40_vm0 = vcmask 195584   ;;  %vm74_vm1 = vcmask 523264  }
   0x5   :  { %57 = vmatpush.msra.mxu0 %v38_v0  ;;  %v72_v2 = vld [vmem:[%s268_s3 + $0x38] sm:$0xff]  ;;  %v71_v3 = vld [vmem:[%s268_s3 + $0x30] sm:$0xff]  ;;  %v36_v4 = vld [vmem:[%s266_s1] sm:$0xff]  ;;  %vm131_vm2 = vcmask 15360  }
   0x6   :  { %86 = vmatpush.msra.mxu1 %v72_v2  ;;  %v34_v5 = vld [vmem:[%s265_s0] sm:$0xff]  ;;  %v70_v6 = vld [vmem:[%s268_s3 + $0x28] sm:$0xff]  ;;  %v68_v8 = vld [vmem:[%s268_s3 + $0x18] sm:$0xff] }
   0x7   :  { %58 = vmatpush.msra.mxu0 %v37_v1  ;;  %v69_v7 = vld [vmem:[%s268_s3 + $0x20] sm:$0xff]  ;;  %v67_v9 = vld [vmem:[%s268_s3 + $0x10] sm:$0xff]  ;;  %v66_v10 = vld [vmem:[%s268_s3 + $0x8] sm:$0xff] }
   0x8   :  { %87 = vmatpush.msra.mxu1 %v71_v3  ;;  %v65_v11 = vld [vmem:[%s268_s3] sm:$0xff]  ;;  %v106_v12 = vld [vmem:[%s269_s4 + $0x38] sm:$0xff]  ;;  %v105_v13 = vld [vmem:[%s269_s4 + $0x30] sm:$0xff] }
   0x9   :  { %59 = vmatpush.msra.mxu0 %v36_v4  ;;  %119 = vmatpush.msra.mxu2 %v106_v12  ;;  %v104_v14 = vld [vmem:[%s269_s4 + $0x28] sm:$0xff]  ;;  %v103_v15 = vld [vmem:[%s269_s4 + $0x20] sm:$0xff]  ;;  %v102_v16 = vld [vmem:[%s269_s4 + $0x18] sm:$0xff] }
   0xa   :  { %138 = vmatmul.msk.f32.vlgmr.msra.gmra.mxu0 %vm40_vm0, %v34_v5  ;;  %88 = vmatpush.msra.mxu1 %v70_v6  ;;  %v35_v17 = vld [vmem:[#allocation2] sm:$0x7]  ;;  %v101_v22 = vld [vmem:[%s269_s4 + $0x10] sm:$0xff]  ;;  %v100_v23 = vld [vmem:[%s269_s4 + $0x8] sm:$0xff] }
   0xb   :  { %120 = vmatpush.msra.mxu2 %v105_v13  ;;  %v39_v18 = vperm.slane %v35_v17, 0  ;;  %v99_v24 = vld [vmem:[%s269_s4] sm:$0xff]  ;;  %v73_v25 = vperm.slane %v35_v17, 1  ;;  %v107_v29 = vperm.slane %v35_v17, 2 }
   0xc   :  { %89 = vmatpush.msra.mxu1 %v69_v7 }
   0xd   :  { %121 = vmatpush.msra.mxu2 %v104_v14 }
   0xe   :  { %90 = vmatpush.msra.mxu1 %v68_v8 }
   0xf   :  { %122 = vmatpush.msra.mxu2 %v103_v15 }
  0x10   :  { %91 = vmatpush.msra.mxu1 %v67_v9 }
  0x11   :  { %123 = vmatpush.msra.mxu2 %v102_v16 }
  0x12   :  { %92 = vmatpush.msra.mxu1 %v66_v10 }
  0x13   :  { %124 = vmatpush.msra.mxu2 %v101_v22 }
  0x14   :  { %93 = vmatpush.msra.mxu1 %v65_v11 }
  0x15   :  { %125 = vmatpush.msra.mxu2 %v100_v23 }
  0x17   :  { %126 = vmatpush.msra.mxu2 %v99_v24 }
  0x87   :  { %v61_v19 = vpop.f32.mrf.mxu0 }
  0x88   :  { %v62_v20 = vadd.f32 %v61_v19, %v39_v18 }
  0x8a   :  { %v64_v21 = vmax.f32 %v62_v20, 0.0 }
  0x8c   :  { %139 = vmatmul.msk.f32.vlgmr.msra.gmra.mxu1 %vm74_vm1, %v64_v21 }
 0x109   :  { %v95_v26 = vpop.f32.mrf.mxu1 }
 0x10a   :  { %v96_v27 = vadd.f32 %v95_v26, %v73_v25 }
 0x10c   :  { %v98_v28 = vmax.f32 %v96_v27, 0.0 }
 0x10e   :  { %140 = vmatmul.msk.f32.vlgmr.msra.gmra.mxu2 %vm74_vm1, %v98_v28 }
 0x191   :  { %v128_v30 = vpop.f32.mrf.mxu2 }
 0x192   :  { %v129_v31 = vadd.f32 %v128_v30, %v107_v29 }
 0x194   :  { %132 = vst.msk [vmem:[%s270_s5] sm:$0xff] %vm131_vm2, %v129_v31 }
 0x195   :  { %137 = vsyncpa [#allocation3], 1 }

</bundles_post_ra>
